<compile_context>
chip_gen: v5e
topology: v5e:2x2
jax: 0.10.0
libtpu: 0.0.40
codegen_flags: <defaults>
</compile_context>

<pallas_src>
import functools

import jax
import jax.numpy as jnp
from jax.experimental import pallas as pl
from jax.experimental.pallas import tpu as pltpu

ALPHA = 0.05


# ----------------------------------------------------------------------------
# Fused path: whole (NB, C, HW) block in VMEM, single pass over HBM.
# ----------------------------------------------------------------------------
def _cca_fused_kernel(x_ref, w1t_ref, b1_ref, w2t_ref, b2_ref, o_ref):
    x = x_ref[...]                                            # (NB, C, HW)
    xf = x.astype(jnp.float32)
    inv_hw = 1.0 / x.shape[-1]

    # Exact two-pass variance inside VMEM (VPU has ample slack here).
    mean = jnp.sum(xf, axis=-1, keepdims=True) * inv_hw       # (NB, C, 1)
    diff = xf - mean
    var = jnp.sum(diff * diff, axis=-1, keepdims=True) * inv_hw
    stats = (jnp.sqrt(var) + mean)[:, :, 0]                   # (NB, C)

    # 1x1 convs as lane-dense matmuls batched over NB.
    h = jnp.dot(stats, w1t_ref[...],
                preferred_element_type=jnp.float32) + b1_ref[...]   # (NB, 4)
    h = jnp.where(h >= 0, h, ALPHA * h)                        # LeakyReLU
    y = jnp.dot(h, w2t_ref[...],
                preferred_element_type=jnp.float32) + b2_ref[...]   # (NB, C)
    scale = jax.nn.sigmoid(y)

    o_ref[...] = x * scale[:, :, None].astype(x.dtype)


# ----------------------------------------------------------------------------
# Chunked path, kernel 1: accumulate per-channel stats over HW chunks, then
# compute the sigmoid scale at the last chunk.
# ----------------------------------------------------------------------------
def _cca_stats_kernel(x_ref, w1t_ref, b1_ref, w2t_ref, b2_ref, scale_ref,
                      s1_ref, s2_ref, *, inv_hw):
    k = pl.program_id(1)

    @pl.when(k == 0)
    def _():
        s1_ref[...] = jnp.zeros_like(s1_ref)
        s2_ref[...] = jnp.zeros_like(s2_ref)

    xf = x_ref[...].astype(jnp.float32)                        # (1, C, THW)
    s1_ref[...] += jnp.sum(xf, axis=-1)                        # (1, C)
    s2_ref[...] += jnp.sum(xf * xf, axis=-1)                   # (1, C)

    @pl.when(k == pl.num_programs(1) - 1)
    def _():
        mean = s1_ref[...] * inv_hw
        var = jnp.maximum(s2_ref[...] * inv_hw - mean * mean, 0.0)
        stats = jnp.sqrt(var) + mean                           # (1, C)
        h = jnp.dot(stats, w1t_ref[...],
                    preferred_element_type=jnp.float32) + b1_ref[...]
        h = jnp.where(h >= 0, h, ALPHA * h)
        y = jnp.dot(h, w2t_ref[...],
                    preferred_element_type=jnp.float32) + b2_ref[...]
        scale_ref[...] = jax.nn.sigmoid(y)[:, :, None]         # (1, C, 1)


# ----------------------------------------------------------------------------
# Chunked path, kernel 2: apply the per-channel scale to x.
# ----------------------------------------------------------------------------
def _cca_apply_kernel(x_ref, scale_ref, o_ref):
    o_ref[...] = x_ref[...] * scale_ref[...].astype(x_ref.dtype)


# ----------------------------------------------------------------------------
# Wrapper / tiling policy.
# ----------------------------------------------------------------------------
def _round_up(a, b):
    return -(-a // b) * b


def _vmem_budget():
    """(vmem_limit_bytes, per-block byte target) from the actual hardware."""
    phys = 64 * 1024 * 1024                      # conservative default (v7x)
    try:
        info = pltpu.get_tpu_info()
        phys = int(getattr(info, "vmem_capacity_bytes", phys))
    except Exception:
        pass
    vmem_limit = min(phys // 2, 64 * 1024 * 1024)   # v5e/v6e: 64 MiB, v7x: 32 MiB
    # ~7 block-sized allocations: 2x double-buffered in, 2x out, in-kernel
    # temporaries, weights + slack.  Never exceed 8 MiB per block.
    target_block = min(vmem_limit // 7, 8 * 1024 * 1024)
    return vmem_limit, max(target_block, 128 * 1024)


def _pick_nb(N, per_image_bytes, target_block_bytes):
    """Images per fused grid step: fill the VMEM budget but keep >=4 steps."""
    nb_cap = max(1, target_block_bytes // per_image_bytes)
    if N >= 4:
        min_steps = 4
    elif N >= 2:
        min_steps = 2
    else:
        min_steps = 1
    nb = max(1, min(nb_cap, N // min_steps, N))
    while N % nb != 0:
        nb -= 1
    return nb


def _pick_thw(C, HW, itemsize, target_block_bytes):
    """HW chunk (multiple of 128) for the chunked path, plus padded HW."""
    hw128 = _round_up(HW, 128)
    thw = max(128, (target_block_bytes // (C * itemsize)) // 128 * 128)
    # Keep at least ~4 HW steps per image so DMA and compute overlap.
    thw = min(thw, max(128, (hw128 // 4) // 128 * 128))
    thw = min(thw, hw128)
    hw_pad = _round_up(HW, thw)
    return thw, hw_pad


def _cparams(sem, vmem_limit):
    return pltpu.CompilerParams(dimension_semantics=sem,
                                vmem_limit_bytes=vmem_limit)


def cca_forward(x, w1, b1, w2, b2, _target_block_bytes=None):
    """CCA forward.  x: (N, C, H, W).  w1: (4, C), b1: (4,), w2: (C, 4), b2: (C,)."""
    N, C, H, W = x.shape
    HW = H * W
    itemsize = x.dtype.itemsize

    # Lane-dense weight layout for (NB,C)@(C,4) and (NB,4)@(4,C).
    w1t = jnp.transpose(w1).astype(jnp.float32)          # (C, 4)
    w2t = jnp.transpose(w2).astype(jnp.float32)          # (4, C)
    b1r = b1.reshape(1, 4).astype(jnp.float32)
    b2r = b2.reshape(1, C).astype(jnp.float32)

    vmem_limit, target_block = _vmem_budget()
    if _target_block_bytes is not None:                  # test hook
        target_block = _target_block_bytes

    per_image = C * HW * itemsize
    use_fused = per_image <= target_block
    if use_fused:
        nb = _pick_nb(N, per_image, target_block)
        # Too few steps to pipeline and each step is big -> HW-chunked path.
        if (N // nb) < 4 and nb * per_image > (1 << 20):
            use_fused = False

    if use_fused:
        # TODO(synk): pad HW to a multiple of 128 (with masked stats) for
        # lane-dense stores when H*W is an awkward size.
        x2 = x.reshape(N, C, HW)
        out2 = pl.pallas_call(
            _cca_fused_kernel,
            out_shape=jax.ShapeDtypeStruct((N, C, HW), x.dtype),
            grid_spec=pltpu.PrefetchScalarGridSpec(
                num_scalar_prefetch=0,
                grid=(N // nb,),
                in_specs=[
                    pl.BlockSpec((nb, C, HW), lambda n: (n, 0, 0)),
                    pl.BlockSpec((C, 4), lambda n: (0, 0)),
                    pl.BlockSpec((1, 4), lambda n: (0, 0)),
                    pl.BlockSpec((4, C), lambda n: (0, 0)),
                    pl.BlockSpec((1, C), lambda n: (0, 0)),
                ],
                out_specs=pl.BlockSpec((nb, C, HW), lambda n: (n, 0, 0)),
            ),
            compiler_params=_cparams(("parallel",), vmem_limit),
        )(x2, w1t, b1r, w2t, b2r)
        return out2.reshape(N, C, H, W)

    # ---------------- HW-chunked two-kernel path (large feature maps) -------
    thw, hw_pad = _pick_thw(C, HW, itemsize, target_block)
    x2 = x.reshape(N, C, HW)
    if hw_pad != HW:
        # Zero padding is exact for sum / sum-of-squares; divide by true HW.
        x2 = jnp.pad(x2, ((0, 0), (0, 0), (0, hw_pad - HW)))
    kh = hw_pad // thw

    scale = pl.pallas_call(
        functools.partial(_cca_stats_kernel, inv_hw=1.0 / HW),
        out_shape=jax.ShapeDtypeStruct((N, C, 1), jnp.float32),
        grid_spec=pltpu.PrefetchScalarGridSpec(
            num_scalar_prefetch=0,
            grid=(N, kh),
            in_specs=[
                pl.BlockSpec((1, C, thw), lambda n, k: (n, 0, k)),
                pl.BlockSpec((C, 4), lambda n, k: (0, 0)),
                pl.BlockSpec((1, 4), lambda n, k: (0, 0)),
                pl.BlockSpec((4, C), lambda n, k: (0, 0)),
                pl.BlockSpec((1, C), lambda n, k: (0, 0)),
            ],
            out_specs=pl.BlockSpec((1, C, 1), lambda n, k: (n, 0, 0)),
            scratch_shapes=[pltpu.VMEM((1, C), jnp.float32),
                            pltpu.VMEM((1, C), jnp.float32)],
        ),
        compiler_params=_cparams(("parallel", "arbitrary"), vmem_limit),
    )(x2, w1t, b1r, w2t, b2r)

    out_pad = pl.pallas_call(
        _cca_apply_kernel,
        out_shape=jax.ShapeDtypeStruct((N, C, hw_pad), x.dtype),
        grid_spec=pltpu.PrefetchScalarGridSpec(
            num_scalar_prefetch=0,
            grid=(N, kh),
            in_specs=[
                pl.BlockSpec((1, C, thw), lambda n, k: (n, 0, k)),
                pl.BlockSpec((1, C, 1), lambda n, k: (n, 0, 0)),
            ],
            out_specs=pl.BlockSpec((1, C, thw), lambda n, k: (n, 0, k)),
        ),
        compiler_params=_cparams(("parallel", "parallel"), vmem_limit),
    )(x2, scale)

    return out_pad[:, :, :HW].reshape(N, C, H, W)


def cca_reference(x, w1, b1, w2, b2):
    """Plain-JAX reference of the PyTorch forward (NCHW, two-pass variance)."""
    mean = jnp.mean(x, axis=(2, 3), keepdims=True)
    var = jnp.mean((x - mean) ** 2, axis=(2, 3), keepdims=True)
    stdv = jnp.sqrt(var)
    s = (stdv + mean)[:, :, 0, 0]                        # (N, C)
    h = s @ w1.T + b1                                    # (N, 4)
    h = jnp.where(h >= 0, h, ALPHA * h)
    y = h @ w2.T + b2                                    # (N, C)
    scale = jax.nn.sigmoid(y)[:, :, None, None]
    return x * scale


if __name__ == "__main__":
    # Conv2 outputs 64 channels and the result multiplies x, so in_channels=64.
    N, C, H, W = 2, 64, 16, 16
    key = jax.random.PRNGKey(0)
    kx, k1, k2, k3, k4 = jax.random.split(key, 5)

    x = jax.random.normal(kx, (N, C, H, W), dtype=jnp.float32)
    # Conv2d 1x1 weights squeezed to 2D.
    w1 = 0.1 * jax.random.normal(k1, (4, C), dtype=jnp.float32)    # Conv1 weight
    b1 = 0.1 * jax.random.normal(k2, (4,), dtype=jnp.float32)      # Conv1 bias
    w2 = 0.1 * jax.random.normal(k3, (C, 4), dtype=jnp.float32)    # Conv2 weight
    b2 = 0.1 * jax.random.normal(k4, (C,), dtype=jnp.float32)      # Conv2 bias

    ref = cca_reference(x, w1, b1, w2, b2)

    # Fused single-pass path (small feature maps).
    out = jax.block_until_ready(cca_forward(x, w1, b1, w2, b2))
    assert out.shape == (N, C, H, W)
    assert jnp.allclose(out, ref, atol=1e-4, rtol=1e-4), "fused path mismatch"

    # HW-chunked two-kernel path, exercised by shrinking the block budget
    # (normally triggered by feature maps too large for a single VMEM block).
    out_c = jax.block_until_ready(
        cca_forward(x, w1, b1, w2, b2, _target_block_bytes=32 * 1024))
    assert jnp.allclose(out_c, ref, atol=1e-4, rtol=1e-4), "chunked path mismatch"

    print("KERNEL_OK")
</pallas_src>

<mosaic_0001>
module attributes {stable_mosaic.version = 11 : i64} {
  func.func @_cca_fused_kernel(%arg0: i32, %arg1: memref<1x64x256xf32, #tpu.memory_space<vmem>>, %arg2: memref<64x4xf32, #tpu.memory_space<vmem>>, %arg3: memref<1x4xf32, #tpu.memory_space<vmem>>, %arg4: memref<4x64xf32, #tpu.memory_space<vmem>>, %arg5: memref<1x64xf32, #tpu.memory_space<vmem>>, %arg6: memref<1x64x256xf32, #tpu.memory_space<vmem>>) attributes {dimension_semantics = [#tpu.dimension_semantics<parallel>], iteration_bounds = array<i64: 2>, scalar_prefetch = 0 : i64, scratch_operands = 0 : i64, tpu.core_type = #tpu.core_type<tc>, window_params = [{transform_indices = @transform_0, window_bounds = array<i64: 1, 64, 256>}, {pipeline_mode = #tpu.pipeline_mode<synchronous>, transform_indices = @transform_1, window_bounds = array<i64: 64, 4>}, {pipeline_mode = #tpu.pipeline_mode<synchronous>, transform_indices = @transform_2, window_bounds = array<i64: 1, 4>}, {pipeline_mode = #tpu.pipeline_mode<synchronous>, transform_indices = @transform_3, window_bounds = array<i64: 4, 64>}, {pipeline_mode = #tpu.pipeline_mode<synchronous>, transform_indices = @transform_4, window_bounds = array<i64: 1, 64>}, {transform_indices = @transform_5, window_bounds = array<i64: 1, 64, 256>}]} {
    %c0 = arith.constant 0 : index
    %c0_0 = arith.constant 0 : index
    %c0_1 = arith.constant 0 : index
    %0 = vector.load %arg1[%c0, %c0_0, %c0_1] : memref<1x64x256xf32, #tpu.memory_space<vmem>>, vector<1x64x256xf32>
    %cst = arith.constant dense<0.000000e+00> : vector<1x64xf32>
    %1 = vector.multi_reduction <add>, %0, %cst [2] : vector<1x64x256xf32> to vector<1x64xf32>
    %2 = vector.shape_cast %1 : vector<1x64xf32> to vector<1x64x1xf32>
    %cst_2 = arith.constant 3.906250e-03 : f32
    %3 = vector.broadcast %cst_2 : f32 to vector<1x64x1xf32>
    %4 = arith.mulf %2, %3 : vector<1x64x1xf32>
    %5 = vector.broadcast %4 : vector<1x64x1xf32> to vector<1x64x256xf32>
    %6 = arith.subf %0, %5 : vector<1x64x256xf32>
    %7 = arith.mulf %6, %6 : vector<1x64x256xf32>
    %cst_3 = arith.constant dense<0.000000e+00> : vector<1x64xf32>
    %8 = vector.multi_reduction <add>, %7, %cst_3 [2] : vector<1x64x256xf32> to vector<1x64xf32>
    %9 = vector.shape_cast %8 : vector<1x64xf32> to vector<1x64x1xf32>
    %cst_4 = arith.constant 3.906250e-03 : f32
    %10 = vector.broadcast %cst_4 : f32 to vector<1x64x1xf32>
    %11 = arith.mulf %9, %10 : vector<1x64x1xf32>
    %12 = math.sqrt %11 : vector<1x64x1xf32>
    %13 = arith.addf %12, %4 : vector<1x64x1xf32>
    %14 = vector.shape_cast %13 : vector<1x64x1xf32> to vector<1x64xf32>
    %c0_5 = arith.constant 0 : index
    %c0_6 = arith.constant 0 : index
    %15 = vector.load %arg2[%c0_5, %c0_6] : memref<64x4xf32, #tpu.memory_space<vmem>>, vector<64x4xf32>
    %cst_7 = arith.constant dense<0.000000e+00> : vector<1x4xf32>
    %16 = tpu.matmul %14, %15, %cst_7 {dimension_numbers = #tpu.dot_dimension_numbers<[1], [0], [0], [1], [0, 0, 1, 1], [], []>} : vector<1x64xf32>, vector<64x4xf32>, vector<1x4xf32> -> vector<1x4xf32>
    %c0_8 = arith.constant 0 : index
    %c0_9 = arith.constant 0 : index
    %17 = vector.load %arg3[%c0_8, %c0_9] : memref<1x4xf32, #tpu.memory_space<vmem>>, vector<1x4xf32>
    %18 = arith.addf %16, %17 : vector<1x4xf32>
    %cst_10 = arith.constant 0.000000e+00 : f32
    %19 = vector.broadcast %cst_10 : f32 to vector<1x4xf32>
    %20 = arith.cmpf oge, %18, %19 : vector<1x4xf32>
    %cst_11 = arith.constant 5.000000e-02 : f32
    %21 = vector.broadcast %cst_11 : f32 to vector<1x4xf32>
    %22 = arith.mulf %21, %18 : vector<1x4xf32>
    %23 = arith.select %20, %18, %22 : vector<1x4xi1>, vector<1x4xf32>
    %c0_12 = arith.constant 0 : index
    %c0_13 = arith.constant 0 : index
    %24 = vector.load %arg4[%c0_12, %c0_13] : memref<4x64xf32, #tpu.memory_space<vmem>>, vector<4x64xf32>
    %cst_14 = arith.constant dense<0.000000e+00> : vector<1x64xf32>
    %25 = tpu.matmul %23, %24, %cst_14 {dimension_numbers = #tpu.dot_dimension_numbers<[1], [0], [0], [1], [0, 0, 1, 1], [], []>} : vector<1x4xf32>, vector<4x64xf32>, vector<1x64xf32> -> vector<1x64xf32>
    %c0_15 = arith.constant 0 : index
    %c0_16 = arith.constant 0 : index
    %26 = vector.load %arg5[%c0_15, %c0_16] : memref<1x64xf32, #tpu.memory_space<vmem>>, vector<1x64xf32>
    %27 = arith.addf %25, %26 : vector<1x64xf32>
    %28 = arith.negf %27 : vector<1x64xf32>
    %29 = math.exp %28 : vector<1x64xf32>
    %cst_17 = arith.constant 1.000000e+00 : f32
    %30 = vector.broadcast %cst_17 : f32 to vector<1x64xf32>
    %31 = arith.addf %30, %29 : vector<1x64xf32>
    %32 = arith.divf %30, %31 : vector<1x64xf32>
    %33 = vector.shape_cast %32 : vector<1x64xf32> to vector<1x64x1xf32>
    %34 = vector.broadcast %33 : vector<1x64x1xf32> to vector<1x64x256xf32>
    %35 = arith.mulf %0, %34 : vector<1x64x256xf32>
    %c0_18 = arith.constant 0 : index
    %c0_19 = arith.constant 0 : index
    %c0_20 = arith.constant 0 : index
    %36 = vector.load %arg6[%c0_18, %c0_19, %c0_20] : memref<1x64x256xf32, #tpu.memory_space<vmem>>, vector<1x64x256xf32>
    tpu.vector_store %arg6[%c0_18, %c0_19, %c0_20], %35 {strides = array<i32>} : memref<1x64x256xf32, #tpu.memory_space<vmem>>, vector<1x64x256xf32>,
    return
  }
  func.func @transform_0(%arg0: i32) -> (i32, i32, i32) {
    %c0_i32 = arith.constant 0 : i32
    %c0_i32_0 = arith.constant 0 : i32
    %c0_i32_1 = arith.constant 0 : i32
    return %arg0, %c0_i32, %c0_i32_0 : i32, i32, i32
  }
  func.func @transform_1(%arg0: i32) -> (i32, i32) {
    %c0_i32 = arith.constant 0 : i32
    %c0_i32_0 = arith.constant 0 : i32
    %c0_i32_1 = arith.constant 0 : i32
    return %c0_i32, %c0_i32_0 : i32, i32
  }
  func.func @transform_2(%arg0: i32) -> (i32, i32) {
    %c0_i32 = arith.constant 0 : i32
    %c0_i32_0 = arith.constant 0 : i32
    %c0_i32_1 = arith.constant 0 : i32
    return %c0_i32, %c0_i32_0 : i32, i32
  }
  func.func @transform_3(%arg0: i32) -> (i32, i32) {
    %c0_i32 = arith.constant 0 : i32
    %c0_i32_0 = arith.constant 0 : i32
    %c0_i32_1 = arith.constant 0 : i32
    return %c0_i32, %c0_i32_0 : i32, i32
  }
  func.func @transform_4(%arg0: i32) -> (i32, i32) {
    %c0_i32 = arith.constant 0 : i32
    %c0_i32_0 = arith.constant 0 : i32
    %c0_i32_1 = arith.constant 0 : i32
    return %c0_i32, %c0_i32_0 : i32, i32
  }
  func.func @transform_5(%arg0: i32) -> (i32, i32, i32) {
    %c0_i32 = arith.constant 0 : i32
    %c0_i32_0 = arith.constant 0 : i32
    %c0_i32_1 = arith.constant 0 : i32
    return %arg0, %c0_i32, %c0_i32_0 : i32, i32, i32
  }
}

</mosaic_0001>

<bundles_post_ra>
// kernel: tpu_custom_call.1
= control target key start
LH: loop header
LB: loop body
LE: loop exit
PB: predicated region body
PF: predicated region fallthrough
CT: control target
= control target key end

     0   :  { %10 = vsyncpa [#allocation3], 0  ;;  %s1397_s0 = inlined_call_operand.hbm [shape: f32[2,64,256], index: 0, kind: input, shape index: {}]   ;;  %s1398_s1 = inlined_call_operand.vmem [shape: f32[64,4], index: 1, kind: input, shape index: {}]   ;;  %s1399_s2 = inlined_call_operand.vmem [shape: f32[1,4], index: 2, kind: input, shape index: {}]   ;;  %s1400_s3 = inlined_call_operand.vmem [shape: f32[4,64], index: 3, kind: input, shape index: {}]   ;;  %s1401_s4 = inlined_call_operand.vmem [shape: f32[1,64], index: 4, kind: input, shape index: {}]   ;;  %s1402_s5 = inlined_call_operand.hbm [shape: f32[2,64,256], index: 5, kind: output, shape index: {}]  }
   0x1   :  { %12 = vsyncpa [#allocation3 + $0x1], 0 }
   0x2   :  { %13 = vsyncpa [#allocation4], 0 }
   0x3   :  { %15 = vsyncpa [#allocation4 + $0x1], 0  ;;  %s985_s18 = smov 0   ;;  %s987_s19 = smov 0  }
   0x4   :  { %s989_s20 = smov 0   ;;  %s991_s21 = smov 0  }
   0x5 LB: > { %s1006_s22 = sadd.s32 4294967295, %s949_s21   ;;  %s754_s23 = sadd.s32 4294967294, %s949_s21   ;;  %s949_s21 = sphi %s991_s21, %s1412_s21   ;;  %s945_s20 = sphi %s989_s20, %s1411_s20   ;;  %s941_s19 = sphi %s987_s19, %s1410_s19   ;;  %s937_s18 = sphi %s985_s18, %s1409_s18  }
   0x6   : > { %s1010_s24 = sadd.s32 1, %s949_s21   ;;  %s28_s25 = sadd.s32 1, %s945_s20 }
   0x7   : > { %s25_s26 = ssub.s32 %s949_s21, %s1010_s24  ;;  %p35_p0 = scmp.ne.s32.totalorder %s945_s20, %s941_s19 }
   0x8   : > { %p26_p1 = scmp.eq.s32.totalorder %s25_s26, 0  ;;  %p36_p2 = scmp.eq.s32.totalorder %s949_s21, 0 }
   0x9   : > { %p41_p3 = scmp.ne.s32.totalorder %s941_s19, %s937_s18  ;;  %p42_p4 = scmp.eq.s32.totalorder %s1006_s22, 0 }
   0xa   : > { %s1022_s27 = scalar_select %p26_p1, %s945_s20, %s28_s25  }
   0xb   : > { %p1024_p5 = por %p36_p2, %p35_p0  ;;  %p1028_p6 = por %p42_p4, %p41_p3 }
   0xc   : > { %p149_p7 = scmp.eq.s32.totalorder %s1006_s22, 1  ;;  %p155_p8 = scmp.eq.s32.totalorder %s754_s23, 1 }
   0xd   : > { %p786_p10 = scmp.lt.s32.totalorder %s949_s21, 2  ;;  %s187_s7 = sand.u32 1, %s945_s20  }
   0xe   : > { %p1035_p11 = por %p149_p7, %p35_p0  ;;  %p1039_p12 = por %p155_p8, %p41_p3 }
   0xf   : > { %s772_s8 = sshll.u32 %s949_s21, 7  ;;  %s757_s9 = sshll.u32 %s187_s7, 7 }
  0x10   : > { %s196_s12 = scalar_lea.hbm %s1397_s0, %s772_s8  ;;  %s191_s14 = scalar_lea.vmem [#allocation2], %s757_s9 }
  0x11   : > { %s197_s13 = sshll.u32 %s196_s12, 4  ;;  %s199_s15 = sshll.u32 %s191_s14, 4  ;;  %s198_s13 = int_to_ptr.hbm [resolvable:$true] %s197_s13  ;;  %s200_s15 = int_to_ptr.vmem [resolvable:$true] %s199_s15 }
  0x12   : > { %p1050_p13 = pnand %p786_p10, %p1024_p5  ;;  %p760_p0 = scmp.ge.s32.totalorder %s949_s21, 1 }
  0x13   : > { %p207_p1 = scmp.lt.s32.totalorder %s949_s21, 3  ;;  %s188_s17 = scalar_lea.sflag [#allocation3], %s187_s7 }
  0x14   : > { %s853_s23 = sshra.s32 %s198_s13, 4  ;;  %p857_p3 = pneg %p1050_p13  ;;  %s854_s23 = int_to_ptr.hbm [resolvable:$true] %s853_s23 }
  0x15   : > { %s855_s25 = scalar_lea.hbm %s854_s23, 128  ;;  %s860_s28 = scalar_lea.hbm %s1397_s0, 256 }
  0x16   : > { %p856_p2 = scmp.ne.s32.totalorder %s854_s23, %s855_s25  ;;  %p861_p5 = scmp.lt.s32.totalorder %s854_s23, %s1397_s0 }
  0x17   : > { %p862_p8 = scmp.lt.s32.totalorder %s860_s28, %s855_s25 }
  0x18   : > { %p858_p4 = pnand %p857_p3, %p856_p2 }
  0x19   : > { %p863_p10 = por %p862_p8, %p861_p5 }
  0x1a   : > { %p859_p7 = pneg %p858_p4 }
  0x1c   : > { %p864_p9 = pnand %p863_p10, %p859_p7 }
  0x1e   : > { %867 = shalt.err (!%p864_p9)
}
  0x1f   : > { %s951_s7 = smov 256   ;;  %s952_s11 = smov 16  }
  0x20   : > { %781 = dma.hbm_to_vmem [thread:$0]  (!%p1050_p13), %s198_s13, 2048, %s200_s15, %s188_s17, %s951_s7, %s951_s7, %s952_s11  }
  0x21   : > { %p208_p2 = pnand %p760_p0, %p207_p1 }
  0x22   : > { %s1071_s12 = sand.u32 (!%p208_p2), 1, %s941_s19  }
  0x23   : > { %211 = sbr.rel (%p208_p2) target bundleno = 783 (0x30f), region = 40  ;;  %s761_s14 = sshll.u32 (!%p208_p2), %s1071_s12, 7 }
  0x24   : > { %s214_s23 = scalar_lea.sflag (!%p208_p2), [#allocation3], %s1071_s12  ;;  %s217_s25 = scalar_lea.vmem (!%p208_p2), [#allocation2], %s761_s14 }
  0x28   : > { %928 = dma.done.wait (%p1028_p6), %s214_s23, 2048  }
  0x29   : > { %930 = vsyncadd (%p1028_p6), %s214_s23, 4294965248  ;;  %v1081_v0 = vld [vmem:[%s217_s25 + $0x40] sm:$0xff]  ;;  %v1083_v1 = vld [vmem:[%s217_s25 + $0x48] sm:$0xff]  ;;  %vm483_vm6 = vcmask 130112   ;;  %vm487_vm9 = vcmask 195712   ;;  %vm491_vm15 = vcmask 261312  }
  0x2a   : > { %v1085_v2 = vld [vmem:[%s217_s25 + $0x20] sm:$0xff]  ;;  %v273_v3 = vadd.f32 %v1083_v1, %v1081_v0  ;;  %v1089_v4 = vld [vmem:[%s217_s25 + $0x28] sm:$0xff]  ;;  %v1099_v9 = vld [vmem:[%s217_s25 + $0x50] sm:$0xff]  ;;  %s1331_s9 = scalar_lea.vmem [#allocation5], %s761_s14  ;;  %s773_s14 = sshll.u32 %s1006_s22, 7 }
  0x2b   : > { %v1091_v5 = vld [vmem:[%s217_s25] sm:$0xff]  ;;  %v1093_v6 = vld [vmem:[%s217_s25 + $0x8] sm:$0xff]  ;;  %v267_v7 = vadd.f32 %v1089_v4, %v1085_v2  ;;  %v1101_v10 = vld [vmem:[%s217_s25 + $0x58] sm:$0xff]  ;;  %s677_s11 = scalar_lea.hbm %s1402_s5, %s773_s14  ;;  %s678_s23 = sshll.u32 %s1331_s9, 4  ;;  %s679_s23 = int_to_ptr.vmem [resolvable:$true] %s678_s23 }
  0x2c   : > { %v261_v8 = vadd.f32 %v1093_v6, %v1091_v5  ;;  %274 = vadd.xlane.f32.xlu2 %v273_v3  ;;  %v1103_v11 = vld [vmem:[%s217_s25 + $0x30] sm:$0xff]  ;;  %v1105_v12 = vld [vmem:[%s217_s25 + $0x38] sm:$0xff]  ;;  %v276_v15 = vadd.f32 %v1101_v10, %v1099_v9  ;;  %v1117_v18 = vld [vmem:[%s217_s25 + $0x60] sm:$0xff]  ;;  %s666_s29 = scalar_lea.sflag [#allocation4], %s1071_s12  ;;  %s903_s17 = scalar_lea.hbm %s1402_s5, 256 }
  0x2d   : > { %268 = vadd.xlane.f32.xlu1 %v267_v7  ;;  %v1107_v13 = vld [vmem:[%s217_s25 + $0x10] sm:$0xff]  ;;  %v1109_v14 = vld [vmem:[%s217_s25 + $0x18] sm:$0xff]  ;;  %v270_v16 = vadd.f32 %v1105_v12, %v1103_v11  ;;  %v1119_v19 = vld [vmem:[%s217_s25 + $0x68] sm:$0xff] }
  0x2e   : > { %262 = vadd.xlane.f32.xlu0 %v261_v8  ;;  %v264_v17 = vadd.f32 %v1109_v14, %v1107_v13  ;;  %v1121_v20 = vld [vmem:[%s217_s25 + $0x70] sm:$0xff]  ;;  %v1123_v21 = vld [vmem:[%s217_s25 + $0x78] sm:$0xff]  ;;  %v279_v22 = vadd.f32 %v1119_v19, %v1117_v18  ;;  %s680_s25 = sshll.u32 %s677_s11, 4  ;;  %s681_s25 = int_to_ptr.hbm [resolvable:$true] %s680_s25 }
  0x2f   : > { %v282_v23 = vadd.f32 %v1123_v21, %v1121_v20  ;;  %s897_s22 = sshra.s32 %s681_s25, 4  ;;  %s898_s22 = int_to_ptr.hbm [resolvable:$true] %s897_s22 }
  0x30   : > { %s899_s13 = scalar_lea.hbm %s898_s22, 128  ;;  %p904_p0 = scmp.lt.s32.totalorder %s898_s22, %s1402_s5 }
  0x31   : > { %p900_p6 = scmp.ne.s32.totalorder %s898_s22, %s899_s13  ;;  %p905_p1 = scmp.lt.s32.totalorder %s903_s17, %s899_s13 }
  0x33   : > { %p901_p9 = pnand %p900_p6, %p1035_p11  ;;  %p906_p3 = por %p905_p1, %p904_p0 }
  0x34   : > { %277 = vadd.xlane.f32.xlu2 %v276_v15 }
  0x35   : > { %271 = vadd.xlane.f32.xlu1 %v270_v16  ;;  %p902_p13 = pneg %p901_p9 }
  0x36   : > { %265 = vadd.xlane.f32.xlu0 %v264_v17 }
  0x37   : > { %p907_p4 = pnand %p906_p3, %p902_p13 }
  0x3d   : > { %283 = vadd.xlane.f32.xlu1 %v282_v23 }
  0x3e   : > { %280 = vadd.xlane.f32.xlu0 %v279_v22 }
  0x9f   : > { %v275_v24 = vpop.xlane.xlu2 %274 }
  0xa0   : > { %v269_v25 = vpop.xlane.xlu1 %268  ;;  %v1159_v51 = vmul.f32 0.00390625, %v275_v24 }
  0xa1   : > { %v263_v26 = vpop.xlane.xlu0 %262  ;;  %v1129_v27 = vmul.f32 0.00390625, %v269_v25 }
  0xa2   : > { %v1131_v28 = vmul.f32 0.00390625, %v263_v26  ;;  %v301_v63 = vsub.f32 %v1081_v0, %v1159_v51  ;;  %v302_v3 = vsub.f32 %v1083_v1, %v1159_v51 }
  0xa3   : > { %v297_v29 = vsub.f32 %v1085_v2, %v1129_v27  ;;  %v298_v30 = vsub.f32 %v1089_v4, %v1129_v27 }
  0xa4   : > { %v293_v31 = vsub.f32 %v1091_v5, %v1131_v28  ;;  %v294_v32 = vsub.f32 %v1093_v6, %v1131_v28  ;;  %v317_v17 = vmul.f32 %v301_v63, %v301_v63  ;;  %v318_v22 = vmul.f32 %v302_v3, %v302_v3 }
  0xa5   : > { %v313_v33 = vmul.f32 %v297_v29, %v297_v29  ;;  %v314_v34 = vmul.f32 %v298_v30, %v298_v30 }
  0xa6   : > { %v309_v35 = vmul.f32 %v293_v31, %v293_v31  ;;  %v310_v36 = vmul.f32 %v294_v32, %v294_v32  ;;  %v337_v30 = vadd.f32 %v318_v22, %v317_v17 }
  0xa7   : > { %v278_v37 = vpop.xlane.xlu2 %277  ;;  %v331_v38 = vadd.f32 %v314_v34, %v313_v33  ;;  %v468_v34 = vld [vmem:[%s1398_s1 + $0x38] sm:$0xff] }
  0xa8   : > { %v325_v39 = vadd.f32 %v310_v36, %v309_v35  ;;  %v1141_v40 = vmul.f32 0.00390625, %v278_v37  ;;  %v272_v41 = vpop.xlane.xlu1 %271  ;;  %v467_v35 = vld [vmem:[%s1398_s1 + $0x30] sm:$0xff]  ;;  %520 = vmatpush.msra.mxu0 %v468_v34 }
  0xa9   : > { %v266_v42 = vpop.xlane.xlu0 %265  ;;  %v1143_v43 = vmul.f32 0.00390625, %v272_v41  ;;  %332 = vadd.xlane.f32.xlu1 %v331_v38  ;;  %v466_v38 = vld [vmem:[%s1398_s1 + $0x28] sm:$0xff] }
  0xaa   : > { %v1145_v44 = vmul.f32 0.00390625, %v266_v42  ;;  %326 = vadd.xlane.f32.xlu2 %v325_v39  ;;  %v303_v45 = vsub.f32 %v1099_v9, %v1141_v40  ;;  %v304_v46 = vsub.f32 %v1101_v10, %v1141_v40  ;;  %521 = vmatpush.msra.mxu0 %v467_v35  ;;  %v465_v42 = vld [vmem:[%s1398_s1 + $0x20] sm:$0xff] }
  0xab   : > { %v299_v47 = vsub.f32 %v1103_v11, %v1143_v43  ;;  %v300_v48 = vsub.f32 %v1105_v12, %v1143_v43 }
  0xac   : > { %v295_v49 = vsub.f32 %v1107_v13, %v1145_v44  ;;  %v296_v50 = vsub.f32 %v1109_v14, %v1145_v44  ;;  %v319_v52 = vmul.f32 %v303_v45, %v303_v45  ;;  %v320_v53 = vmul.f32 %v304_v46, %v304_v46  ;;  %522 = vmatpush.msra.mxu0 %v466_v38  ;;  %v464_v45 = vld [vmem:[%s1398_s1 + $0x18] sm:$0xff]  ;;  %v463_v46 = vld [vmem:[%s1398_s1 + $0x10] sm:$0xff] }
  0xad   : > { %v315_v54 = vmul.f32 %v299_v47, %v299_v47  ;;  %v316_v55 = vmul.f32 %v300_v48, %v300_v48 }
  0xae   : > { %v311_v56 = vmul.f32 %v295_v49, %v295_v49  ;;  %v312_v57 = vmul.f32 %v296_v50, %v296_v50  ;;  %v340_v58 = vadd.f32 %v320_v53, %v319_v52  ;;  %523 = vmatpush.msra.mxu0 %v465_v42  ;;  %v462_v49 = vld [vmem:[%s1398_s1 + $0x8] sm:$0xff] }
  0xaf   : > { %v334_v59 = vadd.f32 %v316_v55, %v315_v54 }
  0xb0   : > { %v328_v60 = vadd.f32 %v312_v57, %v311_v56  ;;  %v284_v62 = vpop.xlane.xlu1 %283  ;;  %524 = vmatpush.msra.mxu0 %v464_v45 }
  0xb1   : > { %v281_v61 = vpop.xlane.xlu0 %280  ;;  %341 = vadd.xlane.f32.xlu1 %v340_v58  ;;  %v1167_v8 = vmul.f32 0.00390625, %v284_v62  ;;  %v461_v58 = vld [vmem:[%s1398_s1] sm:$0xff]  ;;  %v478_v62 = vlaneseq }
  0xb2   : > { %v1165_v7 = vmul.f32 0.00390625, %v281_v61  ;;  %335 = vadd.xlane.f32.xlu2 %v334_v59  ;;  %329 = vadd.xlane.f32.xlu0 %v328_v60 }
  0xb3   : > { %v307_v25 = vsub.f32 %v1121_v20, %v1167_v8  ;;  %v308_v26 = vsub.f32 %v1123_v21, %v1167_v8  ;;  %525 = vmatpush.msra.mxu0 %v463_v46 }
  0xb4   : > { %v305_v15 = vsub.f32 %v1117_v18, %v1165_v7  ;;  %v306_v16 = vsub.f32 %v1119_v19, %v1165_v7 }
  0xb5   : > { %v323_v31 = vmul.f32 %v307_v25, %v307_v25  ;;  %v324_v32 = vmul.f32 %v308_v26, %v308_v26  ;;  %526 = vmatpush.msra.mxu0 %v462_v49  ;;  %v1221_v25 = vand.u32 127, %v478_v62 }
  0xb6   : > { %v321_v23 = vmul.f32 %v305_v15, %v305_v15  ;;  %v322_v24 = vmul.f32 %v306_v16, %v306_v16 }
  0xb7   : > { %v346_v33 = vadd.f32 %v324_v32, %v323_v31  ;;  %527 = vmatpush.msra.mxu0 %v461_v58 }
  0xb8   : > { %v343_v29 = vadd.f32 %v322_v24, %v321_v23 }
  0xba   : > { %344 = vadd.xlane.f32.xlu2 %v343_v29  ;;  %338 = vadd.xlane.f32.xlu0 %v337_v30 }
  0xc2   : > { %347 = vadd.xlane.f32.xlu0 %v346_v33 }
 0x11c   : > { %v333_v36 = vpop.xlane.xlu1 %332 }
 0x11d   : > { %v327_v37 = vpop.xlane.xlu2 %326  ;;  %v1186_v39 = vmul.f32 0.00390625, %v333_v36 }
 0x11e   : > { %v1188_v41 = vmul.f32 0.00390625, %v327_v37  ;;  %v1232_v37 = vadd.s32 4294967280, %v1221_v25 }
 0x11f   : > { %833 = vrsqrt.f32 %v1186_v39  ;;  %vm388_vm2 = vcmp.eq.f32.partialorder %v1186_v39, inf  ;;  %vm390_vm3 = vcmp.eq.f32.partialorder %v1186_v39, 0.0  ;;  %v391_v49 = vand.u32 2147483648, %v1186_v39 }
 0x120   : > { %835 = vrsqrt.f32 %v1188_v41  ;;  %vm364_vm0 = vcmp.eq.f32.partialorder %v1188_v41, inf  ;;  %v367_v38 = vand.u32 2147483648, %v1188_v41  ;;  %vm366_vm1 = vcmp.eq.f32.partialorder %v1188_v41, 0.0 }
 0x124   : > { %v342_v47 = vpop.xlane.xlu1 %341 }
 0x125   : > { %v336_v48 = vpop.xlane.xlu2 %335  ;;  %v834_v50 = vpop.eup %833  ;;  %v1204_v52 = vmul.f32 0.00390625, %v342_v47 }
 0x126   : > { %v1206_v53 = vmul.f32 0.00390625, %v336_v48  ;;  %v330_v54 = vpop.xlane.xlu0 %329  ;;  %v836_v55 = vpop.eup %835  ;;  %v382_v56 = vmul.f32 %v834_v50, %v1186_v39 }
 0x127   : > { %v1209_v57 = vmul.f32 0.00390625, %v330_v54  ;;  %v358_v59 = vmul.f32 %v836_v55, %v1188_v41  ;;  %837 = vrsqrt.f32 %v1204_v52  ;;  %v1241_v54 = vadd.s32 4294967288, %v1221_v25 }
 0x128   : > { %v383_v60 = vmul.f32 %v834_v50, %v382_v56  ;;  %839 = vrsqrt.f32 %v1206_v53  ;;  %vm400_vm4 = vcmp.eq.f32.partialorder %v1206_v53, inf  ;;  %vm402_vm5 = vcmp.eq.f32.partialorder %v1206_v53, 0.0 }
 0x129   : > { %v359_v61 = vmul.f32 %v836_v55, %v358_v59  ;;  %841 = vrsqrt.f32 %v1209_v57  ;;  %vm376_vm7 = vcmp.eq.f32.partialorder %v1209_v57, inf  ;;  %vm378_vm8 = vcmp.eq.f32.partialorder %v1209_v57, 0.0 }
 0x12a   : > { %v384_v63 = vmul.f32 0.5, %v383_v60  ;;  %v1246_v60 = vadd.s32 4294967272, %v1221_v25  ;;  %vm424_vm10 = vcmp.eq.f32.partialorder %v1204_v52, inf  ;;  %vm426_vm11 = vcmp.eq.f32.partialorder %v1204_v52, 0.0 }
 0x12b   : > { %v360_v3 = vmul.f32 0.5, %v359_v61 }
 0x12c   : > { %v385_v17 = vsub.f32 1.5, %v384_v63 }
 0x12d   : > { %v345_v15 = vpop.xlane.xlu2 %344  ;;  %v838_v16 = vpop.eup %837  ;;  %v361_v22 = vsub.f32 1.5, %v360_v3 }
 0x12e   : > { %v1218_v23 = vmul.f32 0.00390625, %v345_v15  ;;  %v339_v24 = vpop.xlane.xlu0 %338  ;;  %v840_v26 = vpop.eup %839  ;;  %v418_v29 = vmul.f32 %v838_v16, %v1204_v52  ;;  %v386_v35 = vmul.f32 %v834_v50, %v385_v17 }
 0x12f   : > { %v1224_v30 = vmul.f32 0.00390625, %v339_v24  ;;  %v842_v31 = vpop.eup %841  ;;  %v362_v32 = vmul.f32 %v836_v55, %v361_v22  ;;  %v394_v33 = vmul.f32 %v840_v26, %v1206_v53 }
 0x130   : > { %843 = vrsqrt.f32 %v1218_v23  ;;  %v370_v34 = vmul.f32 %v842_v31, %v1209_v57  ;;  %v419_v45 = vmul.f32 %v838_v16, %v418_v29  ;;  %v387_v56 = vmul.f32 %v386_v35, %v1186_v39 }
 0x131   : > { %845 = vrsqrt.f32 %v1224_v30  ;;  %v395_v36 = vmul.f32 %v840_v26, %v394_v33  ;;  %v363_v46 = vmul.f32 %v362_v32, %v1188_v41  ;;  %vm436_vm12 = vcmp.eq.f32.partialorder %v1218_v23, inf }
 0x132   : > { %v371_v42 = vmul.f32 %v842_v31, %v370_v34  ;;  %v420_v50 = vmul.f32 0.5, %v419_v45  ;;  %vm412_vm13 = vcmp.eq.f32.partialorder %v1224_v30, inf  ;;  %vm414_vm14 = vcmp.eq.f32.partialorder %v1224_v30, 0.0 }
 0x133   : > { %v396_v47 = vmul.f32 0.5, %v395_v36  ;;  %v365_v24 = vsel %vm364_vm0, %v1188_v41, %v363_v46  ;;  %v389_v36 = vsel %vm388_vm2, %v1186_v39, %v387_v56  ;;  %vm438_vm0 = vcmp.eq.f32.partialorder %v1218_v23, 0.0 }
 0x134   : > { %v372_v48 = vmul.f32 0.5, %v371_v42  ;;  %v421_v17 = vsub.f32 1.5, %v420_v50  ;;  %v392_v56 = vsel %vm390_vm3, %v391_v49, %v389_v36  ;;  %vm499_vm2 = vcmask 392512  }
 0x135   : > { %v397_v58 = vsub.f32 1.5, %v396_v47 }
 0x136   : > { %v844_v55 = vpop.eup %843  ;;  %v348_v59 = vpop.xlane.xlu0 %347  ;;  %v373_v63 = vsub.f32 1.5, %v372_v48  ;;  %v422_v33 = vmul.f32 %v838_v16, %v421_v17  ;;  %v403_v16 = vand.u32 2147483648, %v1206_v53  ;;  %v427_v17 = vand.u32 2147483648, %v1204_v52 }
 0x137   : > { %v846_v61 = vpop.eup %845  ;;  %v430_v3 = vmul.f32 %v844_v55, %v1218_v23  ;;  %v1249_v15 = vmul.f32 0.00390625, %v348_v59  ;;  %v398_v29 = vmul.f32 %v840_v26, %v397_v58  ;;  %v379_v26 = vand.u32 2147483648, %v1209_v57 }
 0x138   : > { %v406_v22 = vmul.f32 %v846_v61, %v1224_v30  ;;  %v374_v32 = vmul.f32 %v842_v31, %v373_v63  ;;  %v368_v31 = vsel %vm366_vm1, %v367_v38, %v365_v24  ;;  %v423_v48 = vmul.f32 %v422_v33, %v1204_v52 }
 0x139   : > { %847 = vrsqrt.f32 %v1249_v15  ;;  %v431_v34 = vmul.f32 %v844_v55, %v430_v3  ;;  %v399_v42 = vmul.f32 %v398_v29, %v1206_v53  ;;  %v453_v63 = vadd.f32 %v368_v31, %v1131_v28 }
 0x13a   : > { %v407_v35 = vmul.f32 %v846_v61, %v406_v22  ;;  %v375_v45 = vmul.f32 %v374_v32, %v1209_v57  ;;  %v425_v22 = vsel %vm424_vm10, %v1204_v52, %v423_v48  ;;  %v493_v29 = vadd.s32 4294967264, %v1221_v25 }
 0x13b   : > { %v432_v46 = vmul.f32 0.5, %v431_v34  ;;  %v401_v41 = vsel %vm400_vm4, %v1206_v53, %v399_v42  ;;  %v455_v33 = vadd.f32 %v392_v56, %v1129_v27  ;;  %v415_v53 = vand.u32 2147483648, %v1224_v30 }
 0x13c   : > { %v408_v47 = vmul.f32 0.5, %v407_v35  ;;  %v377_v50 = vsel %vm376_vm7, %v1209_v57, %v375_v45  ;;  %v404_v32 = vsel %vm402_vm5, %v403_v16, %v401_v41  ;;  %v428_v35 = vsel %vm426_vm11, %v427_v17, %v425_v22 }
 0x13d   : > { %v433_v58 = vsub.f32 1.5, %v432_v46  ;;  %v380_v59 = vsel %vm378_vm8, %v379_v26, %v377_v50  ;;  %v486_v31 = vperm.slane %v455_v33, %v1232_v37  ;;  %v497_v46 = vadd.s32 4294967256, %v1221_v25 }
 0x13e   : > { %v409_v38 = vsub.f32 1.5, %v408_v47  ;;  %v454_v39 = vadd.f32 %v380_v59, %v1145_v44  ;;  %v439_v16 = vand.u32 2147483648, %v1218_v23  ;;  %vm495_vm1 = vcmask 326912  }
 0x13f   : > { %v848_v3 = vpop.eup %847  ;;  %v434_v57 = vmul.f32 %v844_v55, %v433_v58  ;;  %v501_v41 = vadd.s32 4294967248, %v1221_v25  ;;  %vm448_vm3 = vcmp.eq.f32.partialorder %v1249_v15, inf  ;;  %vm450_vm4 = vcmp.eq.f32.partialorder %v1249_v15, 0.0 }
 0x140   : > { %v410_v49 = vmul.f32 %v846_v61, %v409_v38  ;;  %v442_v24 = vmul.f32 %v848_v3, %v1249_v15  ;;  %v482_v34 = vperm.slane %v454_v39, %v1241_v54  ;;  %v480_v61 = vperm.slane %v453_v63, %v1221_v25 }
 0x141   : > { %v435_v28 = vmul.f32 %v434_v57, %v1218_v23  ;;  %v456_v54 = vadd.f32 %v404_v32, %v1143_v43  ;;  %vm503_vm5 = vcmask 458112   ;;  %vm509_vm7 = vcmask 523264  }
 0x142   : > { %v411_v55 = vmul.f32 %v410_v49, %v1224_v30  ;;  %v443_v44 = vmul.f32 %v848_v3, %v442_v24  ;;  %v484_v42 = vsel %vm483_vm6, %v482_v34, %v480_v61  ;;  %vm507_vm6 = vcmask 523712  }
 0x143   : > { %v437_v26 = vsel %vm436_vm12, %v1218_v23, %v435_v28  ;;  %v488_v43 = vsel %vm487_vm9, %v486_v31, %v484_v42  ;;  %v490_v56 = vperm.slane %v456_v54, %v1246_v60  ;;  %v505_v60 = vadd.s32 4294967240, %v1221_v25  ;;  %v469_v25 = vld [vmem:[%s1399_s2] sm:$0x1] }
 0x144   : > { %v413_v27 = vsel %vm412_vm13, %v1224_v30, %v411_v55  ;;  %v444_v36 = vmul.f32 0.5, %v443_v44  ;;  %v458_v30 = vadd.f32 %v428_v35, %v1141_v40  ;;  %v440_v48 = vsel %vm438_vm0, %v439_v16, %v437_v26  ;;  %v536_v55 = vld [vmem:[%s1401_s4] sm:$0x1] }
 0x145   : > { %v416_v45 = vsel %vm414_vm14, %v415_v53, %v413_v27  ;;  %v492_v59 = vsel %vm491_vm15, %v490_v56, %v488_v43  ;;  %v459_v40 = vadd.f32 %v440_v48, %v1165_v7  ;;  %v535_v7 = vld [vmem:[%s1400_s3] sm:$0xf]  ;;  %vm541_vm8 = vcmask 1043456  }
 0x146   : > { %v445_v47 = vsub.f32 1.5, %v444_v36  ;;  %v457_v52 = vadd.f32 %v416_v45, %v1159_v51  ;;  %v451_v51 = vand.u32 2147483648, %v1249_v15  ;;  %v498_v63 = vperm.slane %v458_v30, %v497_v46  ;;  %764 = vmatpush.msk.msra.mxu1 %vm541_vm8, %v535_v7 }
 0x147   : > { %v502_v39 = vperm.slane %v459_v40, %v501_v41  ;;  %vm537_vm10 = vcmask 31744   ;;  %v586_v28 = vshrl.u32 %v478_v62, 7 }
 0x148   : > { %v446_v50 = vmul.f32 %v848_v3, %v445_v47  ;;  %v494_v37 = vperm.slane %v457_v52, %v493_v29 }
 0x149   : > { %824 = vset.pattern.permute.xlu1 %v586_v28  ;;  %v599_v33 = vadd.s32 16, %v586_v28  ;;  %v593_v34 = vadd.s32 8, %v586_v28  ;;  %v605_v30 = vadd.s32 24, %v586_v28  ;;  %v611_v43 = vadd.s32 32, %v586_v28 }
 0x14a   : > { %v447_v58 = vmul.f32 %v446_v50, %v1249_v15  ;;  %v496_v23 = vsel %vm495_vm1, %v494_v37, %v492_v59  ;;  %v629_v48 = vadd.s32 56, %v586_v28  ;;  %v617_v50 = vadd.s32 40, %v586_v28 }
 0x14b   : > { %v500_v57 = vsel %vm499_vm2, %v498_v63, %v496_v23  ;;  %826 = vset.pattern.permute.xlu0 %v599_v33  ;;  %825 = vset.pattern.permute.xlu2 %v593_v34  ;;  %v623_v56 = vadd.s32 48, %v586_v28 }
 0x14c   : > { %v449_v38 = vsel %vm448_vm3, %v1249_v15, %v447_v58  ;;  %v504_v22 = vsel %vm503_vm5, %v502_v39, %v500_v57 }
 0x14d   : > { %v452_v3 = vsel %vm450_vm4, %v451_v51, %v449_v38 }
 0x14e   : > { %v460_v17 = vadd.f32 %v452_v3, %v1167_v8 }
 0x150   : > { %v506_v49 = vperm.slane %v460_v17, %v505_v60 }
 0x152   : > { %v508_v24 = vsel %vm507_vm6, %v506_v49, %v504_v22 }
 0x153   : > { %763 = vmatmul.msk.f32.vlgmr.msra.gmra.mxu0 %vm509_vm7, %v508_v24 }
 0x1d0   : > { %v529_v8 = vpop.f32.mrf.mxu0 }
 0x1d1   : > { %v530_v15 = vadd.f32 %v529_v8, %v469_v25 }
 0x1d3   : > { %v533_v29 = vmul.f32 0.05, %v530_v15  ;;  %vm532_vm9 = vcmp.ge.f32.partialorder %v530_v15, 0.0 }
 0x1d5   : > { %v534_v32 = vsel %vm532_vm9, %v530_v15, %v533_v29 }
 0x1d6   : > { %765 = vmatmul.msk.f32.vlgmr.msra.gmra.mxu1 %vm537_vm10, %v534_v32 }
 0x253   : > { %v562_v44 = vpop.f32.mrf.mxu1 }
 0x254   : > { %v563_v61 = vadd.f32 %v562_v44, %v536_v55 }
 0x256   : > { %v766_v53 = vmul.f32 -1.442695, %v563_v61 }
 0x258   : > { %849 = vpow2.f32 %v766_v53 }
 0x25e   : > { %v850_v35 = vpop.eup %849 }
 0x25f   : > { %v568_v27 = vadd.f32 1.0, %v850_v35 }
 0x261   : > { %851 = vrcp.f32 %v568_v27  ;;  %v580_v62 = vand.u32 2147483648, %v568_v27  ;;  %v578_v26 = vand.u32 2147483647, %v568_v27  ;;  %vm574_vm12 = vweird.f32 %v568_v27 }
 0x263   : > { %v581_v46 = vor.u32 1.1754944e-38, %v580_v62  ;;  %vm579_vm14 = vcmp.eq.f32.partialorder %v578_v26, 8.507059e+37 }
 0x267   : > { %v852_v36 = vpop.eup %851 }
 0x268   : > { %v570_v54 = vmul.f32 %v852_v36, %v568_v27  ;;  %vm575_vm11 = vweird.f32 %v852_v36 }
 0x269   : > { %vm576_vm13 = vmor %vm574_vm12, %vm575_vm11 }
 0x26a   : > { %v571_v42 = vsub.f32 1.0, %v570_v54 }
 0x26c   : > { %v572_v45 = vmul.f32 %v852_v36, %v571_v42 }
 0x26e   : > { %v573_v31 = vadd.f32 %v852_v36, %v572_v45 }
 0x270   : > { %v577_v16 = vsel %vm576_vm13, %v852_v36, %v573_v31 }
 0x271   : > { %v582_v47 = vsel %vm579_vm14, %v581_v46, %v577_v16 }
 0x272   : > { %v584_v52 = vperm.slane %v582_v47, 0 }
 0x274   : > { %601 = vperm.xlu0 %826, %v584_v52   ;;  %595 = vperm.xlu2 %825, %v584_v52  }
 0x275   : > { %589 = vperm.xlu1 %824, %v584_v52  }
 0x27c   : > { %827 = vset.pattern.permute.xlu2 %v605_v30  ;;  %832 = vset.pattern.permute.xlu0 %v629_v48 }
 0x27d   : > { %828 = vset.pattern.permute.xlu1 %v611_v43 }
 0x284   : > { %607 = vperm.xlu2 %827, %v584_v52  }
 0x285   : > { %613 = vperm.xlu1 %828, %v584_v52  }
 0x28c   : > { %829 = vset.pattern.permute.xlu2 %v617_v50 }
 0x28d   : > { %830 = vset.pattern.permute.xlu1 %v623_v56 }
 0x294   : > { %619 = vperm.xlu2 %829, %v584_v52  }
 0x295   : > { %625 = vperm.xlu1 %830, %v584_v52  }
 0x29c   : > { %831 = vset.pattern.permute.xlu2 %v629_v48 }
 0x2a4   : > { %631 = vperm.xlu2 %831, %v584_v52  }
 0x2ce   : > { %v596_v37 = vpop.permute.xlu2 %595 }
 0x2cf   : > { %v635_v58 = vmul.f32 %v596_v37, %v1107_v13  ;;  %v636_v59 = vmul.f32 %v596_v37, %v1109_v14 }
 0x2d1   : > { %651 = vst [vmem:[%s1331_s9 + $0x10] sm:$0xff] %v635_v58 }
 0x2d2   : > { %652 = vst [vmem:[%s1331_s9 + $0x18] sm:$0xff] %v636_v59 }
 0x2de   : > { %v608_v41 = vpop.permute.xlu2 %607 }
 0x2df   : > { %v639_v51 = vmul.f32 %v608_v41, %v1103_v11  ;;  %v640_v13 = vmul.f32 %v608_v41, %v1105_v12 }
 0x2e1   : > { %655 = vst [vmem:[%s1331_s9 + $0x30] sm:$0xff] %v639_v51 }
 0x2e2   : > { %656 = vst [vmem:[%s1331_s9 + $0x38] sm:$0xff] %v640_v13 }
 0x2e6   : > { %v602_v14 = vpop.permute.xlu0 %601 }
 0x2e7   : > { %v637_v40 = vmul.f32 %v602_v14, %v1085_v2  ;;  %v638_v23 = vmul.f32 %v602_v14, %v1089_v4  ;;  %v590_v38 = vpop.permute.xlu1 %589 }
 0x2e8   : > { %v633_v63 = vmul.f32 %v590_v38, %v1091_v5  ;;  %v634_v60 = vmul.f32 %v590_v38, %v1093_v6 }
 0x2e9   : > { %653 = vst [vmem:[%s1331_s9 + $0x20] sm:$0xff] %v637_v40 }
 0x2ea   : > { %654 = vst [vmem:[%s1331_s9 + $0x28] sm:$0xff] %v638_v23 }
 0x2eb   : > { %649 = vst [vmem:[%s1331_s9] sm:$0xff] %v633_v63 }
 0x2ec   : > { %650 = vst [vmem:[%s1331_s9 + $0x8] sm:$0xff] %v634_v60 }
 0x2ee   : > { %v620_v11 = vpop.permute.xlu2 %619 }
 0x2ef   : > { %v643_v12 = vmul.f32 %v620_v11, %v1099_v9  ;;  %v644_v2 = vmul.f32 %v620_v11, %v1101_v10 }
 0x2f1   : > { %659 = vst [vmem:[%s1331_s9 + $0x50] sm:$0xff] %v643_v12 }
 0x2f2   : > { %660 = vst [vmem:[%s1331_s9 + $0x58] sm:$0xff] %v644_v2 }
 0x2f7   : > { %v614_v4 = vpop.permute.xlu1 %613 }
 0x2f8   : > { %v641_v5 = vmul.f32 %v614_v4, %v1081_v0  ;;  %v642_v6 = vmul.f32 %v614_v4, %v1083_v1 }
 0x2fa   : > { %657 = vst [vmem:[%s1331_s9 + $0x40] sm:$0xff] %v641_v5 }
 0x2fb   : > { %658 = vst [vmem:[%s1331_s9 + $0x48] sm:$0xff] %v642_v6 }
 0x2fe   : > { %v632_v3 = vpop.permute.xlu2 %631 }
 0x2ff   : > { %v647_v17 = vmul.f32 %v632_v3, %v1121_v20  ;;  %v648_v9 = vmul.f32 %v632_v3, %v1123_v21 }
 0x301   : > { %663 = vst [vmem:[%s1331_s9 + $0x70] sm:$0xff] %v647_v17 }
 0x302   : > { %664 = vst [vmem:[%s1331_s9 + $0x78] sm:$0xff] %v648_v9 }
 0x307   : > { %v626_v0 = vpop.permute.xlu1 %625 }
 0x308   : > { %v645_v1 = vmul.f32 %v626_v0, %v1117_v18  ;;  %v646_v10 = vmul.f32 %v626_v0, %v1119_v19 }
 0x30a   : > { %661 = vst [vmem:[%s1331_s9 + $0x60] sm:$0xff] %v645_v1 }
 0x30b   : > { %662 = vst [vmem:[%s1331_s9 + $0x68] sm:$0xff] %v646_v10 }
 0x30c   : > { %910 = shalt.err (!%p907_p4)
}
 0x30d   : > { %s953_s12 = smov 256   ;;  %s954_s28 = smov 16  }
 0x30e   : > { %776 = dma.vmem_to_hbm [thread:$0]  (%p1035_p11), %s679_s23, 2048, %s681_s25, %s666_s29, %s953_s12, %s953_s12, %s954_s28  }
 0x30f PF: > { %s695_s9 = sand.u32 1, %s937_s18   ;;  %p1408_p7 = scmp.ge.s32.totalorder %s949_s21, 2 }
 0x310   : > { %s696_s14 = scalar_lea.sflag [#allocation4], %s695_s9 }
 0x311   : > { %p783_p5 = pnand %p1408_p7, %p1039_p12 }
 0x313   : > { %p784_p8 = pneg %p783_p5 }
 0x315   : > { %932 = dma.done.wait (%p784_p8), %s696_s14, 2048  }
 0x316   : > { %934 = vsyncadd (%p784_p8), %s696_s14, 4294965248  ;;  %p18_p10 = scmp.ge.s32.totalorder %s1010_s24, 4   ;;  %s1409_s18 = smov %s941_s19 }
 0x317   : > { %s1410_s19 = smov %s945_s20  ;;  %s1411_s20 = smov %s1022_s27 }
 0x318   : > { %s1412_s21 = smov %s1010_s24  ;;  %20 = sbr.rel (!%p18_p10) target bundleno = 5 (0x5), region = 85 }
 0x31d   :  { %702 = vsyncpa [#allocation3], 1 }
 0x31e   :  { %704 = vsyncpa [#allocation3 + $0x1], 1 }
 0x31f   :  { %705 = vsyncpa [#allocation4], 1 }
 0x320   :  { %707 = vsyncpa [#allocation4 + $0x1], 1 }

</bundles_post_ra>
